<compile_context>
chip_gen: v6e
topology: v6e:2x2x1
jax: 0.10.0
libtpu: 0.0.40
codegen_flags: <defaults>
</compile_context>

<pallas_src>
import functools

import jax
import jax.numpy as jnp
from jax.experimental import pallas as pl
from jax.experimental.pallas import tpu as pltpu


def _ssd_loss_kernel(locs_ref, plabel_ref, glabel_ref, dbox_ref, out_ref, *,
                     scale_xy, scale_wh, num_anchors, m_search_iters):
    f32 = jnp.float32
    A = num_anchors

    locs = locs_ref[0]                         # (8, A)  [ploc ; gloc]
    ploc = locs[:4, :]                         # (4, A)  predicted loc offsets
    gloc = locs[4:8, :]                        # (4, A)  matched gt boxes (xywh)
    dbox = dbox_ref[0]                         # (4, A)  default boxes   (xywh)
    logits = plabel_ref[0].astype(f32)         # (C, A)  class logits (f32 math)
    glabel = glabel_ref[0]                     # (1, A)  int32 labels

    mask = glabel > 0                          # (1, A) positives
    mask_f = mask.astype(f32)
    pos_num = jnp.sum(mask_f, axis=1, keepdims=True)        # (1, 1)

    # ---- _location_vec(gloc): encode gt boxes w.r.t. default boxes ----------
    gxy = scale_xy * (gloc[:2, :] - dbox[:2, :]) / dbox[2:, :]       # (2, A)
    wh = gloc[2:, :]
    wh_safe = jnp.where(wh > 0.0, wh, 1.0)     # guard log() vs degenerate boxes
    gwh = scale_wh * jnp.log(wh_safe / dbox[2:, :])                  # (2, A)
    vec_gd = jnp.concatenate([gxy, gwh], axis=0)                     # (4, A)

    # ---- SmoothL1 (beta=1), sum over 4 coords, masked sum over anchors ------
    diff = ploc - vec_gd
    ad = jnp.abs(diff)
    sl1 = jnp.where(ad < 1.0, 0.5 * diff * diff, ad - 0.5)           # (4, A)
    loc_per_anchor = jnp.sum(sl1, axis=0, keepdims=True)             # (1, A)
    loc_loss = jnp.sum(mask_f * loc_per_anchor, axis=1, keepdims=True)

    # ---- per-anchor cross entropy over the class axis -----------------------
    C = logits.shape[0]
    mx = jnp.max(logits, axis=0, keepdims=True)                      # (1, A)
    lse = mx + jnp.log(jnp.sum(jnp.exp(logits - mx), axis=0, keepdims=True))
    cls = jax.lax.broadcasted_iota(jnp.int32, (C, A), 0)
    tgt = jnp.sum(jnp.where(cls == glabel, logits, 0.0), axis=0, keepdims=True)
    con = lse - tgt                                                  # (1, A) >= 0

    # ---- hard negative mining (exact k-th-largest selection) ----------------
    con_neg = jnp.where(mask, 0.0, con)                              # (1, A) >= 0
    # For non-negative f32, the bit pattern is monotone in value; clear the
    # sign bit so a possible -0.0 maps to +0.0.
    raw_bits = pltpu.bitcast(con_neg, jnp.int32)
    cn_bits = jnp.bitwise_and(raw_bits, jnp.int32(0x7FFFFFFF))       # (1, A)

    k_f = jnp.minimum(3.0 * pos_num, float(A))                       # (1, 1) f32

    # Binary search over bit space: largest threshold t with count(>= t) >= k.
    def t_body(_, carry):
        lo, hi = carry                                               # (1,1) i32
        mid = lo + jnp.right_shift(hi - lo, 1)
        cnt = jnp.sum((cn_bits >= mid).astype(f32), axis=1, keepdims=True)
        pred = cnt >= k_f
        return jnp.where(pred, mid, lo), jnp.where(pred, hi, mid)

    lo0 = jnp.zeros((1, 1), jnp.int32)
    hi0 = jnp.full((1, 1), jnp.iinfo(jnp.int32).max, jnp.int32)
    t_bits, _ = jax.lax.fori_loop(0, 32, t_body, (lo0, hi0))         # (1, 1)

    gt_mask = cn_bits > t_bits                                       # (1, A)
    tie_mask = cn_bits == t_bits                                     # (1, A)
    c_gt = jnp.sum(gt_mask.astype(f32), axis=1, keepdims=True)       # (1, 1)
    n_tie = jnp.maximum(k_f - c_gt, 0.0)                             # ties to keep

    lane_idx = jax.lax.broadcasted_iota(jnp.int32, (1, A), 1)        # (1, A)

    # Smallest index m such that #{j < m : tie} >= n_tie  (stable tie-break
    # by ascending anchor index, matching a stable descending argsort).
    def m_body(_, carry):
        lo, hi = carry                                               # (1,1) i32
        mid = lo + jnp.right_shift(hi - lo, 1)
        cnt = jnp.sum(jnp.where(tie_mask & (lane_idx < mid), 1.0, 0.0),
                      axis=1, keepdims=True)
        pred = cnt >= n_tie
        return jnp.where(pred, lo, mid + 1), jnp.where(pred, mid, hi)

    mlo0 = jnp.zeros((1, 1), jnp.int32)
    mhi0 = jnp.full((1, 1), A, jnp.int32)
    _, m_star = jax.lax.fori_loop(0, m_search_iters, m_body, (mlo0, mhi0))

    neg_mask = jnp.logical_or(gt_mask,
                              jnp.logical_and(tie_mask, lane_idx < m_star))
    neg_mask_f = neg_mask.astype(f32)                                # (1, A)

    con_loss = jnp.sum(con * (mask_f + neg_mask_f), axis=1, keepdims=True)

    # ---- combine -------------------------------------------------------------
    total = loc_loss + con_loss                                      # (1, 1)
    num_mask = (pos_num > 0).astype(f32)
    result = total * num_mask / jnp.maximum(pos_num, 1e-6)           # (1, 1)
    out_ref[...] = result.reshape(1, 1, 1)


def ssd_loss(ploc, plabel, gloc, glabel, dboxes, *, scale_xy, scale_wh):
    """Pallas implementation of SSD Loss.forward. Returns a scalar."""
    N, _, A = ploc.shape
    C = plabel.shape[1]

    # Fuse ploc + gloc into one (N, 8, A) operand: one DMA, full sublane tile.
    locs = jnp.concatenate(
        [ploc.astype(jnp.float32), gloc.astype(jnp.float32)], axis=1)
    glabel3 = glabel.reshape(N, 1, A).astype(jnp.int32)
    dbox = jnp.asarray(dboxes, jnp.float32).reshape(1, 4, A)

    kernel = functools.partial(
        _ssd_loss_kernel,
        scale_xy=float(scale_xy), scale_wh=float(scale_wh),
        num_anchors=A, m_search_iters=max(1, int(A).bit_length()))

    per_image = pl.pallas_call(
        kernel,
        out_shape=jax.ShapeDtypeStruct((N, 1, 1), jnp.float32),
        grid=(N,),
        in_specs=[
            pl.BlockSpec((1, 8, A), lambda b: (b, 0, 0)),   # ploc ++ gloc (f32)
            pl.BlockSpec((1, C, A), lambda b: (b, 0, 0)),   # plabel (native dtype)
            pl.BlockSpec((1, 1, A), lambda b: (b, 0, 0)),   # glabel (int32)
            pl.BlockSpec((1, 4, A), lambda b: (0, 0, 0)),   # dboxes (shared)
        ],
        out_specs=pl.BlockSpec((1, 1, 1), lambda b: (b, 0, 0)),
        compiler_params=pltpu.CompilerParams(
            dimension_semantics=("parallel",),
            vmem_limit_bytes=48 * 1024 * 1024),
    )(locs, plabel, glabel3, dbox)

    # mean over batch (torch: .mean(dim=0))
    return jnp.mean(per_image[:, 0, 0])


def ssd_loss_ref(ploc, plabel, gloc, glabel, dboxes, *, scale_xy, scale_wh):
    """Pure-JAX mirror of the PyTorch forward, for correctness checking."""
    mask = glabel > 0
    pos_num = mask.sum(axis=1)
    gxy = scale_xy * (gloc[:, :2, :] - dboxes[:, :2, :]) / dboxes[:, 2:, :]
    gwh = scale_wh * jnp.log(gloc[:, 2:, :] / dboxes[:, 2:, :])
    vec_gd = jnp.concatenate([gxy, gwh], axis=1)
    d = ploc - vec_gd
    ad = jnp.abs(d)
    sl1 = jnp.where(ad < 1.0, 0.5 * d * d, ad - 0.5).sum(axis=1)
    loc_loss = (mask.astype(jnp.float32) * sl1).sum(axis=1)
    logp = jax.nn.log_softmax(plabel, axis=1)
    con = -jnp.take_along_axis(logp, glabel[:, None, :], axis=1)[:, 0, :]
    con_neg = jnp.where(mask, 0.0, con)
    con_idx = jnp.argsort(-con_neg, axis=1)      # stable descending sort
    con_rank = jnp.argsort(con_idx, axis=1)
    neg_num = jnp.minimum(3 * pos_num, mask.shape[1])[:, None]
    neg_mask = con_rank < neg_num
    con_loss = (con * (mask.astype(jnp.float32) + neg_mask.astype(jnp.float32))
                ).sum(axis=1)
    total = loc_loss + con_loss
    num_mask = (pos_num > 0).astype(jnp.float32)
    pos = jnp.maximum(pos_num.astype(jnp.float32), 1e-6)
    return (total * num_mask / pos).mean()


if __name__ == "__main__":
    key = jax.random.PRNGKey(0)
    N, C, A = 2, 8, 256   # small stand-in for N x (4|C) x 8732

    k1, k2, k3, k4, k5, k6, k7, k8 = jax.random.split(key, 8)
    ploc = jax.random.normal(k1, (N, 4, A), jnp.float32) * 0.5
    # logits kept in bf16 in HBM (kernel widens to f32 internally)
    plabel = jax.random.normal(k2, (N, C, A), jnp.float32).astype(jnp.bfloat16)

    # ground-truth boxes in xywh; w,h strictly positive (needed for log)
    g_xy = jax.random.uniform(k3, (N, 2, A), jnp.float32, 0.05, 0.95)
    g_wh = jax.random.uniform(k4, (N, 2, A), jnp.float32, 0.05, 0.6)
    gloc = jnp.concatenate([g_xy, g_wh], axis=1)

    # sparse labels (~10% positives) so hard-negative mining is exercised
    raw_lbl = jax.random.randint(k5, (N, A), 1, C)
    keep = jax.random.uniform(k6, (N, A)) < 0.1
    glabel = jnp.where(keep, raw_lbl, 0).astype(jnp.int32)

    # synthetic default boxes (1, 4, A), xywh order, w/h positive
    d_xy = jax.random.uniform(k7, (1, 2, A), jnp.float32, 0.05, 0.95)
    d_wh = jax.random.uniform(k8, (1, 2, A), jnp.float32, 0.05, 0.5)
    dboxes = jnp.concatenate([d_xy, d_wh], axis=1)

    # SSD DefaultBoxes: scale_xy=0.1, scale_wh=0.2  ->  1/scale = 10, 5
    scale_xy, scale_wh = 10.0, 5.0

    out = ssd_loss(ploc, plabel, gloc, glabel, dboxes,
                   scale_xy=scale_xy, scale_wh=scale_wh)
    out = jax.block_until_ready(out)

    ref = ssd_loss_ref(ploc, plabel.astype(jnp.float32), gloc, glabel, dboxes,
                       scale_xy=scale_xy, scale_wh=scale_wh)
    assert bool(jnp.isfinite(out)), "non-finite loss"
    assert jnp.allclose(out, ref, rtol=1e-3, atol=1e-3), (out, ref)
    print("KERNEL_OK")
</pallas_src>

<mosaic_0001>
module attributes {stable_mosaic.version = 11 : i64} {
  func.func @_ssd_loss_kernel(%arg0: i32, %arg1: memref<1x8x256xf32, #tpu.memory_space<vmem>>, %arg2: memref<1x8x256xbf16, #tpu.memory_space<vmem>>, %arg3: memref<1x1x256xi32, #tpu.memory_space<vmem>>, %arg4: memref<1x4x256xf32, #tpu.memory_space<vmem>>, %arg5: memref<1x1x1xf32, #tpu.memory_space<vmem>>) attributes {dimension_semantics = [#tpu.dimension_semantics<parallel>], iteration_bounds = array<i64: 2>, scalar_prefetch = 0 : i64, scratch_operands = 0 : i64, tpu.core_type = #tpu.core_type<tc>, window_params = [{transform_indices = @transform_0, window_bounds = array<i64: 1, 8, 256>}, {transform_indices = @transform_1, window_bounds = array<i64: 1, 8, 256>}, {transform_indices = @transform_2, window_bounds = array<i64: 1, 1, 256>}, {pipeline_mode = #tpu.pipeline_mode<synchronous>, transform_indices = @transform_3, window_bounds = array<i64: 1, 4, 256>}, {transform_indices = @transform_4, window_bounds = array<i64: 1, 1, 1>}]} {
    %c0 = arith.constant 0 : index
    %c0_0 = arith.constant 0 : index
    %c0_1 = arith.constant 0 : index
    %0 = vector.load %arg1[%c0, %c0_0, %c0_1] : memref<1x8x256xf32, #tpu.memory_space<vmem>>, vector<1x8x256xf32>
    %1 = vector.shape_cast %0 : vector<1x8x256xf32> to vector<8x256xf32>
    %2 = vector.extract_strided_slice %1 {offsets = [0, 0], sizes = [4, 256], strides = [1, 1]} : vector<8x256xf32> to vector<4x256xf32>
    %3 = vector.extract_strided_slice %1 {offsets = [4, 0], sizes = [4, 256], strides = [1, 1]} : vector<8x256xf32> to vector<4x256xf32>
    %c0_2 = arith.constant 0 : index
    %c0_3 = arith.constant 0 : index
    %c0_4 = arith.constant 0 : index
    %4 = vector.load %arg4[%c0_2, %c0_3, %c0_4] : memref<1x4x256xf32, #tpu.memory_space<vmem>>, vector<1x4x256xf32>
    %5 = vector.shape_cast %4 : vector<1x4x256xf32> to vector<4x256xf32>
    %c0_5 = arith.constant 0 : index
    %c0_6 = arith.constant 0 : index
    %c0_7 = arith.constant 0 : index
    %6 = vector.load %arg2[%c0_5, %c0_6, %c0_7] : memref<1x8x256xbf16, #tpu.memory_space<vmem>>, vector<1x8x256xbf16>
    %7 = vector.shape_cast %6 : vector<1x8x256xbf16> to vector<8x256xbf16>
    %8 = arith.extf %7 : vector<8x256xbf16> to vector<8x256xf32>
    %c0_8 = arith.constant 0 : index
    %c0_9 = arith.constant 0 : index
    %c0_10 = arith.constant 0 : index
    %9 = vector.load %arg3[%c0_8, %c0_9, %c0_10] : memref<1x1x256xi32, #tpu.memory_space<vmem>>, vector<1x1x256xi32>
    %10 = vector.shape_cast %9 : vector<1x1x256xi32> to vector<1x256xi32>
    %c0_i32 = arith.constant 0 : i32
    %11 = vector.broadcast %c0_i32 : i32 to vector<1x256xi32>
    %12 = arith.cmpi sgt, %10, %11 : vector<1x256xi32>
    %13 = arith.extui %12 : vector<1x256xi1> to vector<1x256xi32>
    %14 = arith.sitofp %13 : vector<1x256xi32> to vector<1x256xf32>
    %cst = arith.constant dense<0.000000e+00> : vector<1xf32>
    %15 = vector.multi_reduction <add>, %14, %cst [1] : vector<1x256xf32> to vector<1xf32>
    %16 = vector.shape_cast %15 : vector<1xf32> to vector<1x1xf32>
    %17 = vector.extract_strided_slice %3 {offsets = [0, 0], sizes = [2, 256], strides = [1, 1]} : vector<4x256xf32> to vector<2x256xf32>
    %18 = vector.extract_strided_slice %5 {offsets = [0, 0], sizes = [2, 256], strides = [1, 1]} : vector<4x256xf32> to vector<2x256xf32>
    %19 = arith.subf %17, %18 : vector<2x256xf32>
    %cst_11 = arith.constant 1.000000e+01 : f32
    %20 = vector.broadcast %cst_11 : f32 to vector<2x256xf32>
    %21 = arith.mulf %20, %19 : vector<2x256xf32>
    %22 = vector.extract_strided_slice %5 {offsets = [2, 0], sizes = [2, 256], strides = [1, 1]} : vector<4x256xf32> to vector<2x256xf32>
    %23 = arith.divf %21, %22 : vector<2x256xf32>
    %24 = vector.extract_strided_slice %3 {offsets = [2, 0], sizes = [2, 256], strides = [1, 1]} : vector<4x256xf32> to vector<2x256xf32>
    %cst_12 = arith.constant 0.000000e+00 : f32
    %25 = vector.broadcast %cst_12 : f32 to vector<2x256xf32>
    %26 = arith.cmpf ogt, %24, %25 : vector<2x256xf32>
    %cst_13 = arith.constant 1.000000e+00 : f32
    %27 = vector.broadcast %cst_13 : f32 to vector<2x256xf32>
    %28 = arith.select %26, %24, %27 : vector<2x256xi1>, vector<2x256xf32>
    %29 = vector.extract_strided_slice %5 {offsets = [2, 0], sizes = [2, 256], strides = [1, 1]} : vector<4x256xf32> to vector<2x256xf32>
    %30 = arith.divf %28, %29 : vector<2x256xf32>
    %31 = math.log %30 : vector<2x256xf32>
    %cst_14 = arith.constant 5.000000e+00 : f32
    %32 = vector.broadcast %cst_14 : f32 to vector<2x256xf32>
    %33 = arith.mulf %32, %31 : vector<2x256xf32>
    %34 = tpu.concatenate %23, %33 in 0 : vector<2x256xf32>, vector<2x256xf32> -> vector<4x256xf32>
    %35 = arith.subf %2, %34 : vector<4x256xf32>
    %36 = math.absf %35 : vector<4x256xf32>
    %cst_15 = arith.constant 1.000000e+00 : f32
    %37 = vector.broadcast %cst_15 : f32 to vector<4x256xf32>
    %38 = arith.cmpf olt, %36, %37 : vector<4x256xf32>
    %cst_16 = arith.constant 5.000000e-01 : f32
    %39 = vector.broadcast %cst_16 : f32 to vector<4x256xf32>
    %40 = arith.mulf %39, %35 : vector<4x256xf32>
    %41 = arith.mulf %40, %35 : vector<4x256xf32>
    %cst_17 = arith.constant 5.000000e-01 : f32
    %42 = vector.broadcast %cst_17 : f32 to vector<4x256xf32>
    %43 = arith.subf %36, %42 : vector<4x256xf32>
    %44 = arith.select %38, %41, %43 : vector<4x256xi1>, vector<4x256xf32>
    %cst_18 = arith.constant dense<0.000000e+00> : vector<256xf32>
    %45 = vector.multi_reduction <add>, %44, %cst_18 [0] : vector<4x256xf32> to vector<256xf32>
    %46 = vector.shape_cast %45 : vector<256xf32> to vector<1x256xf32>
    %47 = arith.mulf %14, %46 : vector<1x256xf32>
    %cst_19 = arith.constant dense<0.000000e+00> : vector<1xf32>
    %48 = vector.multi_reduction <add>, %47, %cst_19 [1] : vector<1x256xf32> to vector<1xf32>
    %49 = vector.shape_cast %48 : vector<1xf32> to vector<1x1xf32>
    %cst_20 = arith.constant dense<0xFF800000> : vector<256xf32>
    %50 = vector.multi_reduction <maximumf>, %8, %cst_20 [0] : vector<8x256xf32> to vector<256xf32>
    %51 = vector.shape_cast %50 : vector<256xf32> to vector<1x256xf32>
    %52 = vector.broadcast %51 : vector<1x256xf32> to vector<8x256xf32>
    %53 = arith.subf %8, %52 : vector<8x256xf32>
    %54 = math.exp %53 : vector<8x256xf32>
    %cst_21 = arith.constant dense<0.000000e+00> : vector<256xf32>
    %55 = vector.multi_reduction <add>, %54, %cst_21 [0] : vector<8x256xf32> to vector<256xf32>
    %56 = vector.shape_cast %55 : vector<256xf32> to vector<1x256xf32>
    %57 = math.log %56 : vector<1x256xf32>
    %58 = arith.addf %51, %57 : vector<1x256xf32>
    %59 = tpu.iota {dimensions = array<i32: 0>} : vector<8x256xi32>
    %60 = vector.broadcast %10 : vector<1x256xi32> to vector<8x256xi32>
    %61 = arith.cmpi eq, %59, %60 : vector<8x256xi32>
    %cst_22 = arith.constant 0.000000e+00 : f32
    %62 = vector.broadcast %cst_22 : f32 to vector<8x256xf32>
    %63 = arith.select %61, %8, %62 : vector<8x256xi1>, vector<8x256xf32>
    %cst_23 = arith.constant dense<0.000000e+00> : vector<256xf32>
    %64 = vector.multi_reduction <add>, %63, %cst_23 [0] : vector<8x256xf32> to vector<256xf32>
    %65 = vector.shape_cast %64 : vector<256xf32> to vector<1x256xf32>
    %66 = arith.subf %58, %65 : vector<1x256xf32>
    %cst_24 = arith.constant 0.000000e+00 : f32
    %67 = vector.broadcast %cst_24 : f32 to vector<1x256xf32>
    %68 = arith.select %12, %67, %66 : vector<1x256xi1>, vector<1x256xf32>
    %69 = tpu.bitcast %68 : vector<1x256xf32> -> vector<1x256xi32>
    %c2147483647_i32 = arith.constant 2147483647 : i32
    %70 = vector.broadcast %c2147483647_i32 : i32 to vector<1x256xi32>
    %71 = arith.andi %69, %70 : vector<1x256xi32>
    %cst_25 = arith.constant 3.000000e+00 : f32
    %72 = vector.broadcast %cst_25 : f32 to vector<1x1xf32>
    %73 = arith.mulf %72, %16 : vector<1x1xf32>
    %cst_26 = arith.constant 2.560000e+02 : f32
    %74 = vector.broadcast %cst_26 : f32 to vector<1x1xf32>
    %75 = arith.minimumf %73, %74 : vector<1x1xf32>
    %c0_i32_27 = arith.constant 0 : i32
    %76 = vector.broadcast %c0_i32_27 : i32 to vector<1x1xi32>
    %c2147483647_i32_28 = arith.constant 2147483647 : i32
    %77 = vector.broadcast %c2147483647_i32_28 : i32 to vector<1x1xi32>
    %c0_i32_29 = arith.constant 0 : i32
    %c32_i32 = arith.constant 32 : i32
    %78 = arith.addi %c0_i32_29, %c32_i32 : i32
    %c1_i32 = arith.constant 1 : i32
    %79:2 = scf.for %arg6 = %c0_i32_29 to %78 step %c1_i32 iter_args(%arg7 = %76, %arg8 = %77) -> (vector<1x1xi32>, vector<1x1xi32>)  : i32 {
      %117 = arith.subi %arg8, %arg7 : vector<1x1xi32>
      %c1_i32_41 = arith.constant 1 : i32
      %118 = vector.broadcast %c1_i32_41 : i32 to vector<1x1xi32>
      %119 = arith.shrsi %117, %118 : vector<1x1xi32>
      %120 = arith.addi %arg7, %119 : vector<1x1xi32>
      %121 = vector.broadcast %120 : vector<1x1xi32> to vector<1x256xi32>
      %122 = arith.cmpi sge, %71, %121 : vector<1x256xi32>
      %123 = arith.extui %122 : vector<1x256xi1> to vector<1x256xi32>
      %124 = arith.sitofp %123 : vector<1x256xi32> to vector<1x256xf32>
      %cst_42 = arith.constant dense<0.000000e+00> : vector<1xf32>
      %125 = vector.multi_reduction <add>, %124, %cst_42 [1] : vector<1x256xf32> to vector<1xf32>
      %126 = vector.shape_cast %125 : vector<1xf32> to vector<1x1xf32>
      %127 = arith.cmpf oge, %126, %75 : vector<1x1xf32>
      %128 = arith.select %127, %120, %arg7 : vector<1x1xi1>, vector<1x1xi32>
      %129 = arith.select %127, %arg8, %120 : vector<1x1xi1>, vector<1x1xi32>
      scf.yield %128, %129 : vector<1x1xi32>, vector<1x1xi32>
    }
    %80 = vector.broadcast %79#0 : vector<1x1xi32> to vector<1x256xi32>
    %81 = arith.cmpi sgt, %71, %80 : vector<1x256xi32>
    %82 = vector.broadcast %79#0 : vector<1x1xi32> to vector<1x256xi32>
    %83 = arith.cmpi eq, %71, %82 : vector<1x256xi32>
    %84 = arith.extui %81 : vector<1x256xi1> to vector<1x256xi32>
    %85 = arith.sitofp %84 : vector<1x256xi32> to vector<1x256xf32>
    %cst_30 = arith.constant dense<0.000000e+00> : vector<1xf32>
    %86 = vector.multi_reduction <add>, %85, %cst_30 [1] : vector<1x256xf32> to vector<1xf32>
    %87 = vector.shape_cast %86 : vector<1xf32> to vector<1x1xf32>
    %88 = arith.subf %75, %87 : vector<1x1xf32>
    %cst_31 = arith.constant 0.000000e+00 : f32
    %89 = vector.broadcast %cst_31 : f32 to vector<1x1xf32>
    %90 = arith.maximumf %88, %89 : vector<1x1xf32>
    %91 = tpu.iota {dimensions = array<i32: 1>} : vector<1x256xi32>
    %c0_i32_32 = arith.constant 0 : i32
    %92 = vector.broadcast %c0_i32_32 : i32 to vector<1x1xi32>
    %c256_i32 = arith.constant 256 : i32
    %93 = vector.broadcast %c256_i32 : i32 to vector<1x1xi32>
    %c0_i32_33 = arith.constant 0 : i32
    %c9_i32 = arith.constant 9 : i32
    %94 = arith.addi %c0_i32_33, %c9_i32 : i32
    %c1_i32_34 = arith.constant 1 : i32
    %95:2 = scf.for %arg6 = %c0_i32_33 to %94 step %c1_i32_34 iter_args(%arg7 = %92, %arg8 = %93) -> (vector<1x1xi32>, vector<1x1xi32>)  : i32 {
      %117 = arith.subi %arg8, %arg7 : vector<1x1xi32>
      %c1_i32_41 = arith.constant 1 : i32
      %118 = vector.broadcast %c1_i32_41 : i32 to vector<1x1xi32>
      %119 = arith.shrsi %117, %118 : vector<1x1xi32>
      %120 = arith.addi %arg7, %119 : vector<1x1xi32>
      %121 = vector.broadcast %120 : vector<1x1xi32> to vector<1x256xi32>
      %122 = arith.cmpi slt, %91, %121 : vector<1x256xi32>
      %123 = arith.andi %83, %122 : vector<1x256xi1>
      %cst_42 = arith.constant 1.000000e+00 : f32
      %cst_43 = arith.constant 0.000000e+00 : f32
      %124 = vector.broadcast %cst_42 : f32 to vector<1x256xf32>
      %125 = vector.broadcast %cst_43 : f32 to vector<1x256xf32>
      %126 = arith.select %123, %124, %125 : vector<1x256xi1>, vector<1x256xf32>
      %cst_44 = arith.constant dense<0.000000e+00> : vector<1xf32>
      %127 = vector.multi_reduction <add>, %126, %cst_44 [1] : vector<1x256xf32> to vector<1xf32>
      %128 = vector.shape_cast %127 : vector<1xf32> to vector<1x1xf32>
      %129 = arith.cmpf oge, %128, %90 : vector<1x1xf32>
      %c1_i32_45 = arith.constant 1 : i32
      %130 = vector.broadcast %c1_i32_45 : i32 to vector<1x1xi32>
      %131 = arith.addi %120, %130 : vector<1x1xi32>
      %132 = arith.select %129, %arg7, %131 : vector<1x1xi1>, vector<1x1xi32>
      %133 = arith.select %129, %120, %arg8 : vector<1x1xi1>, vector<1x1xi32>
      scf.yield %132, %133 : vector<1x1xi32>, vector<1x1xi32>
    }
    %96 = vector.broadcast %95#1 : vector<1x1xi32> to vector<1x256xi32>
    %97 = arith.cmpi slt, %91, %96 : vector<1x256xi32>
    %98 = arith.andi %83, %97 : vector<1x256xi1>
    %99 = arith.ori %81, %98 : vector<1x256xi1>
    %100 = arith.extui %99 : vector<1x256xi1> to vector<1x256xi32>
    %101 = arith.sitofp %100 : vector<1x256xi32> to vector<1x256xf32>
    %102 = arith.addf %14, %101 : vector<1x256xf32>
    %103 = arith.mulf %66, %102 : vector<1x256xf32>
    %cst_35 = arith.constant dense<0.000000e+00> : vector<1xf32>
    %104 = vector.multi_reduction <add>, %103, %cst_35 [1] : vector<1x256xf32> to vector<1xf32>
    %105 = vector.shape_cast %104 : vector<1xf32> to vector<1x1xf32>
    %106 = arith.addf %49, %105 : vector<1x1xf32>
    %cst_36 = arith.constant 0.000000e+00 : f32
    %107 = vector.broadcast %cst_36 : f32 to vector<1x1xf32>
    %108 = arith.cmpf ogt, %16, %107 : vector<1x1xf32>
    %109 = arith.extui %108 : vector<1x1xi1> to vector<1x1xi32>
    %110 = arith.sitofp %109 : vector<1x1xi32> to vector<1x1xf32>
    %111 = arith.mulf %106, %110 : vector<1x1xf32>
    %cst_37 = arith.constant 9.99999997E-7 : f32
    %112 = vector.broadcast %cst_37 : f32 to vector<1x1xf32>
    %113 = arith.maximumf %16, %112 : vector<1x1xf32>
    %114 = arith.divf %111, %113 : vector<1x1xf32>
    %115 = vector.shape_cast %114 : vector<1x1xf32> to vector<1x1x1xf32>
    %c0_38 = arith.constant 0 : index
    %c0_39 = arith.constant 0 : index
    %c0_40 = arith.constant 0 : index
    %116 = vector.load %arg5[%c0_38, %c0_39, %c0_40] : memref<1x1x1xf32, #tpu.memory_space<vmem>>, vector<1x1x1xf32>
    tpu.vector_store %arg5[%c0_38, %c0_39, %c0_40], %115 {strides = array<i32>} : memref<1x1x1xf32, #tpu.memory_space<vmem>>, vector<1x1x1xf32>,
    return
  }
  func.func @transform_0(%arg0: i32) -> (i32, i32, i32) {
    %c0_i32 = arith.constant 0 : i32
    %c0_i32_0 = arith.constant 0 : i32
    %c0_i32_1 = arith.constant 0 : i32
    return %arg0, %c0_i32, %c0_i32_0 : i32, i32, i32
  }
  func.func @transform_1(%arg0: i32) -> (i32, i32, i32) {
    %c0_i32 = arith.constant 0 : i32
    %c0_i32_0 = arith.constant 0 : i32
    %c0_i32_1 = arith.constant 0 : i32
    return %arg0, %c0_i32, %c0_i32_0 : i32, i32, i32
  }
  func.func @transform_2(%arg0: i32) -> (i32, i32, i32) {
    %c0_i32 = arith.constant 0 : i32
    %c0_i32_0 = arith.constant 0 : i32
    %c0_i32_1 = arith.constant 0 : i32
    return %arg0, %c0_i32, %c0_i32_0 : i32, i32, i32
  }
  func.func @transform_3(%arg0: i32) -> (i32, i32, i32) {
    %c0_i32 = arith.constant 0 : i32
    %c0_i32_0 = arith.constant 0 : i32
    %c0_i32_1 = arith.constant 0 : i32
    %c0_i32_2 = arith.constant 0 : i32
    return %c0_i32, %c0_i32_0, %c0_i32_1 : i32, i32, i32
  }
  func.func @transform_4(%arg0: i32) -> (i32, i32, i32) {
    %c0_i32 = arith.constant 0 : i32
    %c0_i32_0 = arith.constant 0 : i32
    %c0_i32_1 = arith.constant 0 : i32
    return %arg0, %c0_i32, %c0_i32_0 : i32, i32, i32
  }
}

</mosaic_0001>

<bundles_post_ra>
// kernel: tpu_custom_call.1
= control target key start
LH: loop header
LB: loop body
LE: loop exit
PB: predicated region body
PF: predicated region fallthrough
CT: control target
= control target key end

     0   :  { %s1543_s0 = inlined_call_operand.hbm [shape: f32[2,8,256], index: 0, kind: input, shape index: {}]   ;;  %s1544_s1 = inlined_call_operand.hbm [shape: bf16[2,8,256], index: 1, kind: input, shape index: {}]   ;;  %s1545_s2 = inlined_call_operand.hbm [shape: s32[2,1,256], index: 2, kind: input, shape index: {}]   ;;  %s1546_s3 = inlined_call_operand.hbm [shape: f32[1,4,256], index: 3, kind: input, shape index: {}]   ;;  %s1547_s4 = inlined_call_operand.vmem [shape: f32[2,1,1], index: 4, kind: output, shape index: {}]  }
   0x1   :  { %1551 = sst [smem:[#allocation12_spill]] %s1543_s0 }
   0x2   :  { %9 = vsyncpa [#allocation3], 0 }
   0x3   :  { %11 = vsyncpa [#allocation3 + $0x1], 0 }
   0x4   :  { %12 = vsyncpa [#allocation5], 0 }
   0x5   :  { %14 = vsyncpa [#allocation5 + $0x1], 0 }
   0x6   :  { %15 = vsyncpa [#allocation8], 0  ;;  %s1194_s15 = smov 0   ;;  %s1196_s16 = smov 0  }
   0x7   :  { %s1198_s17 = smov 0   ;;  %s1200_s18 = smov 0  }
   0x8 LB: > { %s1215_s19 = sadd.s32 1, %s1135_s18   ;;  %s28_s20 = sadd.s32 1, %s1131_s17  ;;  %s1135_s18 = sphi %s1200_s18, %s1569_s18   ;;  %s1131_s17 = sphi %s1198_s17, %s1568_s17   ;;  %s1127_s16 = sphi %s1196_s16, %s1567_s16   ;;  %s1123_s15 = sphi %s1194_s15, %s1566_s15  }
   0x9   : > { %s25_s21 = ssub.s32 %s1135_s18, %s1215_s19  ;;  %p35_p0 = scmp.ne.s32.totalorder %s1131_s17, %s1127_s16 }
   0xa   : > { %p26_p1 = scmp.eq.s32.totalorder %s25_s21, 0  ;;  %p36_p2 = scmp.eq.s32.totalorder %s1135_s18, 0 }
   0xb   : > { %p848_p3 = scmp.lt.s32.totalorder %s1135_s18, 2  ;;  %s1228_s23 = sand.u32 1, %s1131_s17  }
   0xc   : > { %s1225_s22 = scalar_select %p26_p1, %s1131_s17, %s28_s20  }
   0xd   : > { %p37_p4 = por %p36_p2, %p35_p0  ;;  %s194_s24 = sand.u32 1, %s1135_s18  }
   0xe   : > { %s797_s25 = sshll.u32 %s1228_s23, 3  ;;  %s821_s27 = sshll.u32 %s1135_s18, 7 }
   0xf   : > { %p1232_p5 = pnand %p848_p3, %p37_p4  ;;  %s1240_s30 = scalar_lea.hbm %s1544_s1, %s821_s27 }
  0x10   : > { %s198_s5 = scalar_lea.vmem [#allocation4], %s797_s25  ;;  %s1242_s7 = scalar_lea.sflag [#allocation5], %s194_s24 }
  0x11   : > { %s206_s6 = sshll.u32 %s198_s5, 4  ;;  %s959_s8 = scalar_lea.hbm %s1240_s30, 128  ;;  %s207_s6 = int_to_ptr.vmem [resolvable:$true] %s206_s6 }
  0x12   : > { %p960_p6 = scmp.ne.s32.totalorder %s1240_s30, %s959_s8  ;;  %p1248_p7 = pneg %p1232_p5 }
  0x13   : > { %s964_s12 = scalar_lea.hbm %s1544_s1, 256  ;;  %p965_p10 = scmp.lt.s32.totalorder %s1240_s30, %s1544_s1 }
  0x14   : > { %p962_p8 = pnand %p1248_p7, %p960_p6  ;;  %p966_p11 = scmp.lt.s32.totalorder %s964_s12, %s959_s8 }
  0x16   : > { %p963_p9 = pneg %p962_p8  ;;  %p967_p12 = por %p966_p11, %p965_p10 }
  0x18   : > { %p968_p13 = pnand %p967_p12, %p963_p9 }
  0x1a   : > { %971 = shalt.err (!%p968_p13)
}
  0x1b   : > { %s972_s20 = scalar_lea.vmem %s207_s6, 128  ;;  %s1161_s21 = smov [#allocation4]  }
  0x1c   : > { %p973_p0 = scmp.ne.s32.totalorder %s207_s6, %s972_s20  ;;  %s977_s24 = sshll.u32 %s1161_s21, 4  ;;  %s978_s24 = int_to_ptr.vmem [resolvable:$false] %s977_s24 }
  0x1d   : > { %s979_s25 = scalar_lea.vmem %s978_s24, 256  ;;  %p980_p3 = scmp.lt.s32.totalorder %s207_s6, %s978_s24 }
  0x1e   : > { %p975_p1 = pnand %p973_p0, %p1248_p7  ;;  %p981_p4 = scmp.lt.s32.totalorder %s979_s25, %s972_s20 }
  0x20   : > { %p976_p2 = pneg %p975_p1  ;;  %p982_p6 = por %p981_p4, %p980_p3 }
  0x22   : > { %p983_p8 = pnand %p982_p6, %p976_p2 }
  0x24   : > { %986 = shalt.err (!%p983_p8)
}
  0x25   : > { %843 = dma.hbm_to_vmem [thread:$0]  (!%p1232_p5), %s1240_s30, 128, %s207_s6, %s1242_s7  }
  0x26   : > { %s1268_s27 = sadd.s32 4294967295, %s1135_s18   ;;  %p41_p9 = scmp.ne.s32.totalorder %s1127_s16, %s1123_s15 }
  0x27   : > { %p1548_p10 = scmp.eq.s32.totalorder %s1268_s27, 0  ;;  %p791_p11 = scmp.ge.s32.totalorder %s1135_s18, 1 }
  0x28   : > { %p151_p12 = scmp.lt.s32.totalorder %s1135_s18, 3  ;;  %s1162_s30 = smov [#allocation7]  }
  0x29   : > { %p1277_p13 = por %p1548_p10, %p41_p9  ;;  %s164_s5 = sshll.u32 %s1162_s30, 4  ;;  %s165_s5 = int_to_ptr.vmem [resolvable:$true] %s164_s5 }
  0x2a   : > { %p1281_p0 = pnand %p791_p11, %p151_p12  ;;  %s794_s15 = sshll.u32 %s1228_s23, 4 }
  0x2b   : > { %s1554_s28 = scalar_select %p1277_p13, 1, 0 }
  0x2c   : > { %s1555_s29 = scalar_select %p1281_p0, 1, 0 }
  0x2d   : > { %p833_p1 = pneg %p1281_p0  ;;  %s820_s6 = sshll.u32 %s1135_s18, 8 }
  0x2e   : > { %s1557_s0 = sld [smem:[#allocation12_spill]]  ;;  %s179_s13 = scalar_lea.vmem [#allocation2], %s794_s15 }
  0x2f   : > { %p1291_p2 = pnand %p833_p1, %p1548_p10  ;;  %s187_s14 = sshll.u32 %s179_s13, 4  ;;  %s1301_s14 = int_to_ptr.vmem [resolvable:$true] %s187_s14 }
  0x30   : > { %s800_s20 = sshll.u32 %s1228_s23, 1  ;;  %s998_s21 = scalar_lea.vmem %s165_s5, 128 }
  0x31   : > { %p989_p3 = pneg %p1291_p2  ;;  %p999_p4 = scmp.ne.s32.totalorder %s165_s5, %s998_s21 }
  0x32   : > { %p1006_p9 = scmp.lt.s32.totalorder %s165_s5, %s165_s5  ;;  %p1007_p11 = scmp.lt.s32.totalorder %s998_s21, %s998_s21 }
  0x33   : > { %p1001_p6 = pnand %p999_p4, %p989_p3 }
  0x34   : > { %s1298_s12 = scalar_lea.hbm %s1557_s0, %s820_s6  ;;  %p1008_p12 = por %p1007_p11, %p1006_p9 }
  0x35   : > { %p1002_p8 = pneg %p1001_p6 }
  0x37   : > { %p1009_p1 = pnand %p1008_p12, %p1002_p8 }
  0x39   : > { %1012 = shalt.err (!%p1009_p1)
}
  0x3a   : > { %836 = dma.hbm_to_vmem [thread:$0]  (!%p1291_p2), %s1546_s3, 128, %s165_s5, [#allocation8]  }
  0x3b   : > { %s176_s30 = scalar_lea.sflag [#allocation3], %s1228_s23  ;;  %s1013_s15 = scalar_lea.hbm %s1298_s12, 256 }
  0x3c   : > { %p1014_p3 = scmp.ne.s32.totalorder %s1298_s12, %s1013_s15  ;;  %s1018_s11 = scalar_lea.hbm %s1557_s0, 512 }
  0x3d   : > { %p1019_p8 = scmp.lt.s32.totalorder %s1298_s12, %s1557_s0  ;;  %p1020_p9 = scmp.lt.s32.totalorder %s1018_s11, %s1013_s15 }
  0x3e   : > { %p1016_p4 = pnand %p1014_p3, %p1248_p7 }
  0x3f   : > { %p1021_p11 = por %p1020_p9, %p1019_p8 }
  0x40   : > { %p1017_p6 = pneg %p1016_p4 }
  0x42   : > { %p1022_p12 = pnand %p1021_p11, %p1017_p6 }
  0x44   : > { %1025 = shalt.err (!%p1022_p12)
}
  0x45   : > { %s1026_s5 = scalar_lea.vmem %s1301_s14, 256  ;;  %s1163_s21 = smov [#allocation2]  }
  0x46   : > { %p1027_p2 = scmp.ne.s32.totalorder %s1301_s14, %s1026_s5  ;;  %s1031_s24 = sshll.u32 %s1163_s21, 4  ;;  %s1032_s24 = int_to_ptr.vmem [resolvable:$false] %s1031_s24 }
  0x47   : > { %s1033_s25 = scalar_lea.vmem %s1032_s24, 512  ;;  %p1034_p4 = scmp.lt.s32.totalorder %s1301_s14, %s1032_s24 }
  0x48   : > { %p1029_p1 = pnand %p1027_p2, %p1248_p7  ;;  %p1035_p10 = scmp.lt.s32.totalorder %s1033_s25, %s1026_s5 }
  0x4a   : > { %p1030_p3 = pneg %p1029_p1  ;;  %p1036_p13 = por %p1035_p10, %p1034_p4 }
  0x4c   : > { %p1037_p0 = pnand %p1036_p13, %p1030_p3 }
  0x4e   : > { %1040 = shalt.err (!%p1037_p0)
}
  0x4f   : > { %840 = dma.hbm_to_vmem [thread:$0]  (!%p1232_p5), %s1298_s12, 256, %s1301_s14, %s176_s30  }
  0x50   : > { %s822_s15 = sshll.u32 %s1135_s18, 5  ;;  %s217_s8 = scalar_lea.vmem [#allocation6], %s800_s20 }
  0x51   : > { %s223_s11 = scalar_lea.hbm %s1545_s2, %s822_s15  ;;  %s225_s13 = sshll.u32 %s217_s8, 4  ;;  %s226_s13 = int_to_ptr.vmem [resolvable:$true] %s225_s13 }
  0x52   : > { %s1041_s5 = scalar_lea.hbm %s223_s11, 32  ;;  %s1046_s25 = scalar_lea.hbm %s1545_s2, 64 }
  0x53   : > { %p1042_p10 = scmp.ne.s32.totalorder %s223_s11, %s1041_s5  ;;  %p1047_p6 = scmp.lt.s32.totalorder %s223_s11, %s1545_s2 }
  0x54   : > { %p1048_p8 = scmp.lt.s32.totalorder %s1046_s25, %s1041_s5 }
  0x55   : > { %p1044_p13 = pnand %p1042_p10, %p1248_p7 }
  0x56   : > { %p1049_p9 = por %p1048_p8, %p1047_p6 }
  0x57   : > { %p1045_p0 = pneg %p1044_p13 }
  0x59   : > { %p1050_p11 = pnand %p1049_p9, %p1045_p0 }
  0x5b   : > { %1053 = shalt.err (!%p1050_p11)
}
  0x5c   : > { %s1054_s18 = scalar_lea.vmem %s226_s13, 32  ;;  %s1164_s23 = smov [#allocation6]  }
  0x5d   : > { %p1055_p12 = scmp.ne.s32.totalorder %s226_s13, %s1054_s18  ;;  %s1059_s14 = sshll.u32 %s1164_s23, 4  ;;  %s1060_s14 = int_to_ptr.vmem [resolvable:$false] %s1059_s14 }
  0x5e   : > { %s1061_s20 = scalar_lea.vmem %s1060_s14, 64  ;;  %p1062_p3 = scmp.lt.s32.totalorder %s226_s13, %s1060_s14 }
  0x5f   : > { %p1057_p2 = pnand %p1055_p12, %p1248_p7  ;;  %p1063_p4 = scmp.lt.s32.totalorder %s1061_s20, %s1054_s18 }
  0x61   : > { %p1058_p1 = pneg %p1057_p2  ;;  %p1064_p10 = por %p1063_p4, %p1062_p3 }
  0x63   : > { %p1065_p13 = pnand %p1064_p10, %p1058_p1 }
  0x65   : > { %1068 = shalt.err (!%p1065_p13)
}
  0x66   : > { %846 = dma.hbm_to_vmem [thread:$0]  (!%p1232_p5), %s223_s11, 32, %s226_s13, %s1242_s7  }
  0x67   : > { %p1558_p0 = scmp.ne.s32.totalorder %s1555_s29, 0 }
  0x68   : > { %s236_s0 = sand.u32 (!%p1558_p0), 1, %s1127_s16   ;;  %p1559_p7 = scmp.ne.s32.totalorder (!%p1558_p0), %s1554_s28, 0 }
  0x69   : > { %234 = sbr.rel (%p1558_p0) target bundleno = 948 (0x3b4), region = 36  ;;  %s804_s9 = sshll.u32 (!%p1558_p0), %s236_s0, 4 }
  0x6a   : > { %s237_s30 = scalar_lea.sflag (!%p1558_p0), [#allocation3], %s236_s0  ;;  %s1353_s15 = scalar_lea.vmem (!%p1558_p0), [#allocation2], %s804_s9 }
  0x6e   : > { %1110 = dma.done.wait (%p1559_p7), %s237_s30, 256  }
  0x6f   : > { %1112 = vsyncadd (%p1559_p7), %s237_s30, 4294967040  ;;  %s245_s26 = sand.u32 1, %s1268_s27   ;;  %s805_s6 = sshll.u32 %s236_s0, 3 }
  0x70   : > { %s246_s7 = scalar_lea.sflag [#allocation5], %s245_s26  ;;  %s249_s10 = scalar_lea.vmem [#allocation4], %s805_s6 }
  0x71   : > { %1114 = dma.done.wait (%p1559_p7), %s246_s7, 160  }
  0x72   : > { %1116 = vsyncadd (%p1559_p7), %s246_s7, 4294967136  ;;  %s806_s29 = sshll.u32 %s236_s0, 1  ;;  %p1560_p5 = scmp.eq.s32.totalorder %s1268_s27, 0 }
  0x73   : > { %s258_s11 = scalar_lea.vmem [#allocation6], %s806_s29 }
  0x74   : > { %1118 = dma.done.wait (%p1560_p5), [#allocation8], 128   ;;  %p1561_p6 = pmov %p1560_p5 }
  0x75   : > { %v309_v0 = vlaneseq  ;;  %v300_v4 = vld [vmem:[#allocation7] sm:$0xff]  ;;  %v1377_v5 = vld [vmem:[%s258_s11] sm:$0x3]  ;;  %v301_v6 = vld [vmem:[%s249_s10] sm:$0xff]  ;;  %vm319_vm1 = vcmask 1040384   ;;  %v1165_v7 = vmov 0.0  }
  0x76   : > { %1120 = vsyncadd (%p1561_p6), [#allocation8], 4294967168  ;;  %937 = vrcp.f32 %v300_v4  ;;  %vm305_vm0 = vcmp.gt.s32.totalorder %v1377_v5, 0  ;;  %v1389_v11 = vunpack.c.l.bf16 %v301_v6  ;;  %v303_v14 = vunpack.c.h.bf16 %v301_v6  ;;  %v299_v25 = vld [vmem:[%s1353_s15 + $0x8] sm:$0xff]  ;;  %v1418_v41 = vld [vmem:[%s1353_s15] sm:$0xff]  ;;  %p295_p8 = scmp.lt.s32.totalorder %s1268_s27, 1 }
  0x77   : > { %v1369_v1 = vshrl.u32 %v309_v0, 7  ;;  %v1383_v8 = vsel %vm305_vm0, 1.0, %v1165_v7  ;;  %v332_v18 = vcombine.high %v300_v4, %v300_v4  ;;  %v326_v27 = vcombine.low %v300_v4, %v300_v4  ;;  %s1145_s5 = smov 0  }
  0x78   : > { %v434_v17 = vrot.slane %v1389_v11, 4  ;;  %v440_v21 = vrot.slane %v303_v14, 4  ;;  %vm342_vm4 = vcmp.gt.f32.partialorder %v299_v25, 0.0  ;;  %v333_v44 = vrot.slane %v300_v4, 6  ;;  %s1571_s27 = smov (!%p295_p8, %s1268_s27), 1 }
  0x79   : > { %v1372_v2 = vsub.s32 0, %v1369_v1  ;;  %v1375_v3 = vsub.s32 1, %v1369_v1  ;;  %v334_v29 = vrot.slane %v332_v18, 6  ;;  %v344_v33 = vsel %vm342_vm4, %v299_v25, 1.0  ;;  %s297_s13 = scalar_lea.vmem %s1547_s4, %s1571_s27 }
  0x7a   : > { %v435_v23 = vmax.f32 %v1389_v11, %v434_v17  ;;  %v441_v24 = vmax.f32 %v303_v14, %v440_v21  ;;  %939 = vrcp.f32 %v326_v27  ;;  %vm341_vm5 = vcmp.gt.f32.partialorder %v1418_v41, 0.0 }
  0x7b   : > { %v475_v9 = vrot.slane %v1377_v5, %v1372_v2  ;;  %v479_v10 = vrot.slane %v1377_v5, %v1375_v3  ;;  %v312_v12 = vrot.slane %v1383_v8, %v1372_v2  ;;  %v316_v13 = vrot.slane %v1383_v8, %v1375_v3 }
  0x7c   : > { %v436_v26 = vrot.slane %v435_v23, 2  ;;  %v442_v28 = vrot.slane %v441_v24, 2  ;;  %941 = vrcp.f32 %v334_v29  ;;  %v329_v45 = vsub.f32 %v299_v25, %v300_v4 }
  0x7d   : > { %vm1396_vm2 = vcmp.eq.s32.totalorder %v1369_v1, %v475_v9  ;;  %vm1401_vm3 = vcmp.eq.s32.totalorder %v1369_v1, %v479_v10  ;;  %v320_v19 = vsel %vm319_vm1, %v312_v12, 0.0  ;;  %v321_v20 = vsel %vm319_vm1, %v316_v13, 0.0 }
  0x7e   : > { %v322_v22 = vadd.f32 %v321_v20, %v320_v19  ;;  %v437_v30 = vmax.f32 %v435_v23, %v436_v26  ;;  %v443_v31 = vmax.f32 %v441_v24, %v442_v28  ;;  %v343_v46 = vsel %vm341_vm5, %v1418_v41, 1.0 }
  0x7f   : > { %v331_v48 = vmul.f32 10.0, %v329_v45  ;;  %v328_v54 = vsub.f32 %v1418_v41, %v326_v27  ;;  %vm367_vm6 = vcmask 1041408   ;;  %v482_v63 = vsel %vm1396_vm2, %v1389_v11, 0.0 }
  0x80   : > { %323 = vadd.xlane.f32.xlu0 %v322_v22  ;;  %v438_v32 = vrot.slane %v437_v30, 1  ;;  %v444_v34 = vrot.slane %v443_v31, 1  ;;  %v483_v4 = vsel %vm1401_vm3, %v303_v14, 0.0  ;;  %v484_v19 = vrot.slane %v482_v63, 4 }
  0x81   : > { %v330_v6 = vmul.f32 10.0, %v328_v54  ;;  %v490_v20 = vrot.slane %v483_v4, 4  ;;  %vm384_vm8 = vcmask 1043456  }
  0x82   : > { %v1410_v36 = vmax.f32 %v437_v30, %v438_v32  ;;  %v1412_v37 = vmax.f32 %v443_v31, %v444_v34  ;;  %v485_v28 = vadd.f32 %v484_v19, %v482_v63 }
  0x83   : > { %v938_v35 = vpop.eup %937  ;;  %v491_v31 = vadd.f32 %v490_v20, %v483_v4 }
  0x84   : > { %v348_v38 = vmul.f32 %v938_v35, %v344_v33  ;;  %v446_v39 = vsub.f32 %v1389_v11, %v1410_v36  ;;  %v447_v40 = vsub.f32 %v303_v14, %v1412_v37 }
  0x86   : > { %943 = vlog2.f32 %v348_v38  ;;  %v448_v42 = vmul.f32 1.442695, %v446_v39  ;;  %v450_v43 = vmul.f32 1.442695, %v447_v40  ;;  %v486_v40 = vrot.slane %v485_v28, 2 }
  0x87   : > { %v940_v47 = vpop.eup %939 }
  0x88   : > { %945 = vpow2.f32 %v448_v42  ;;  %v346_v50 = vmul.f32 %v940_v47, %v343_v46  ;;  %v492_v42 = vrot.slane %v491_v31, 2 }
  0x89   : > { %947 = vpow2.f32 %v450_v43  ;;  %v942_v49 = vpop.eup %941 }
  0x8a   : > { %949 = vrcp.f32 %v333_v44  ;;  %v340_v51 = vmul.f32 %v942_v49, %v331_v48  ;;  %v487_v48 = vadd.f32 %v486_v40, %v485_v28  ;;  %v493_v49 = vadd.f32 %v492_v42, %v491_v31 }
  0x8b   : > { %951 = vlog2.f32 %v346_v50  ;;  %v1137_v42 = vmov 2147483647  }
  0x8c   : > { %v358_v57 = vrot.slane %v340_v51, 4  ;;  %v488_v54 = vrot.slane %v487_v48, 1 }
  0x8e   : > { %v489_v4 = vadd.f32 %v488_v54, %v487_v48 }
  0x93   : > { %v944_v52 = vpop.eup %943 }
  0x94   : > { %v352_v53 = vmul.f32 0.6931472, %v944_v52 }
  0x95   : > { %v946_v55 = vpop.eup %945 }
  0x96   : > { %v354_v56 = vmul.f32 5.0, %v352_v53  ;;  %v948_v58 = vpop.eup %947  ;;  %v452_v59 = vrot.slane %v946_v55, 4 }
  0x97   : > { %v458_v60 = vrot.slane %v948_v58, 4  ;;  %v950_v9 = vpop.eup %949 }
  0x98   : > { %v364_v61 = vrot.slane %v354_v56, 4  ;;  %v453_v62 = vadd.f32 %v946_v55, %v452_v59  ;;  %v338_v22 = vmul.f32 %v950_v9, %v330_v6  ;;  %v952_v26 = vpop.eup %951  ;;  %v494_v56 = vrot.slane %v493_v49, 1 }
  0x99   : > { %v459_v10 = vadd.f32 %v948_v58, %v458_v60  ;;  %v350_v27 = vmul.f32 0.6931472, %v952_v26  ;;  %v1166_v60 = vmov 1966171168  }
  0x9a   : > { %v369_v12 = vsel %vm367_vm6, %v358_v57, %v364_v61  ;;  %v454_v13 = vrot.slane %v453_v62, 2  ;;  %v357_v32 = vrot.slane %v338_v22, 4  ;;  %v403_v61 = vunpack.c.l.s4 %v1166_v60 }
  0x9b   : > { %v371_v17 = vsub.f32 %v299_v25, %v369_v12  ;;  %v460_v18 = vrot.slane %v459_v10, 2  ;;  %v353_v25 = vmul.f32 5.0, %v350_v27  ;;  %v495_v9 = vadd.f32 %v494_v56, %v493_v49 }
  0x9c   : > { %v455_v21 = vadd.f32 %v454_v13, %v453_v62 }
  0x9d   : > { %v373_v23 = vand.u32 2147483647, %v371_v17  ;;  %v377_v24 = vmul.f32 0.5, %v371_v17  ;;  %v461_v15 = vadd.f32 %v460_v18, %v459_v10  ;;  %v363_v35 = vrot.slane %v353_v25, 4 }
  0x9e   : > { %v456_v11 = vrot.slane %v455_v21, 1 }
  0x9f   : > { %vm375_vm7 = vcmp.lt.f32.partialorder %v373_v23, 1.0  ;;  %v379_v14 = vmul.f32 %v377_v24, %v371_v17  ;;  %v462_v16 = vrot.slane %v461_v15, 1  ;;  %v810_v29 = vadd.f32 -0.5, %v373_v23 }
  0xa0   : > { %v457_v30 = vadd.f32 %v456_v11, %v455_v21  ;;  %v368_v43 = vsel %vm367_vm6, %v357_v32, %v363_v35  ;;  %v404_v17 = vunpack.c.0.s8 %v403_v61 }
  0xa1   : > { %v463_v33 = vadd.f32 %v462_v16, %v461_v15  ;;  %v383_v34 = vsel %vm375_vm7, %v379_v14, %v810_v29  ;;  %v370_v44 = vsub.f32 %v1418_v41, %v368_v43  ;;  %v1141_v43 = vmov 0  }
  0xa2   : > { %953 = vlog2.f32 %v457_v30  ;;  %v392_v38 = vsel %vm384_vm8, %v383_v34, 0.0  ;;  %v1440_v24 = vsub.s32 %v404_v17, %v1369_v1 }
  0xa3   : > { %955 = vlog2.f32 %v463_v33  ;;  %v393_v39 = vrot.slane %v392_v38, 4  ;;  %v372_v46 = vand.u32 2147483647, %v370_v44  ;;  %v376_v47 = vmul.f32 0.5, %v370_v44 }
  0xa5   : > { %v394_v45 = vadd.f32 %v393_v39, %v392_v38  ;;  %vm374_vm9 = vcmp.lt.f32.partialorder %v372_v46, 1.0  ;;  %v378_v50 = vmul.f32 %v376_v47, %v370_v44  ;;  %v809_v51 = vadd.f32 -0.5, %v372_v46 }
  0xa7   : > { %v395_v52 = vrot.slane %v394_v45, 2  ;;  %v382_v53 = vsel %vm374_vm9, %v378_v50, %v809_v51 }
  0xa8   : > { %v385_v55 = vsel %vm384_vm8, %v382_v53, 0.0 }
  0xa9   : > { %v386_v57 = vrot.slane %v385_v55, 4  ;;  %v396_v58 = vadd.f32 %v395_v52, %v394_v45 }
  0xab   : > { %v387_v41 = vadd.f32 %v386_v57, %v385_v55  ;;  %v397_v12 = vrot.slane %v396_v58, 1 }
  0xad   : > { %v388_v10 = vrot.slane %v387_v41, 2  ;;  %v398_v23 = vadd.f32 %v397_v12, %v396_v58 }
  0xaf   : > { %v954_v59 = vpop.eup %953  ;;  %v389_v19 = vadd.f32 %v388_v10, %v387_v41 }
  0xb0   : > { %v956_v62 = vpop.eup %955  ;;  %v465_v63 = vmul.f32 0.6931472, %v954_v59 }
  0xb1   : > { %v467_v6 = vmul.f32 0.6931472, %v956_v62  ;;  %v390_v22 = vrot.slane %v389_v19, 1 }
  0xb2   : > { %v468_v13 = vadd.f32 %v465_v63, %v1410_v36 }
  0xb3   : > { %v469_v18 = vadd.f32 %v467_v6, %v1412_v37  ;;  %v391_v15 = vadd.f32 %v390_v22, %v389_v19 }
  0xb4   : > { %v1435_v20 = vsub.f32 %v468_v13, %v489_v4 }
  0xb5   : > { %v1437_v21 = vsub.f32 %v469_v18, %v495_v9  ;;  %v401_v36 = vcombine.low %v391_v15, %v398_v23 }
  0xb7   : > { %v500_v26 = vcombine.low %v1435_v20, %v1437_v21  ;;  %v408_v27 = vrot.slane %v401_v36, %v1440_v24 }
  0xb9   : > { %v507_v11 = vrot.slane %v500_v26, %v1440_v24  ;;  %v415_v16 = vrot.slane %v408_v27, %v1440_v24 }
  0xbb   : > { %v514_v37 = vrot.slane %v507_v11, %v1440_v24  ;;  %v417_v29 = vmul.f32 %v1383_v8, %v415_v16 }
  0xbd   : > { %v516_v14 = vsel %vm305_vm0, 0.0, %v514_v37  ;;  %v422_v25 = vrot.slane %v417_v29, %v1372_v2  ;;  %v426_v32 = vrot.slane %v417_v29, %v1375_v3 }
  0xbe   : > { %v521_v1 = vrot.slane %v516_v14, %v1372_v2  ;;  %v525_v28 = vrot.slane %v516_v14, %v1375_v3 }
  0xbf   : > { %v429_v33 = vsel %vm319_vm1, %v422_v25, 0.0  ;;  %v430_v5 = vsel %vm319_vm1, %v426_v32, 0.0 }
  0xc0   : > { %v1453_v30 = vand.u32 2147483647, %v521_v1  ;;  %v1455_v31 = vand.u32 2147483647, %v525_v28  ;;  %v431_v34 = vadd.f32 %v430_v5, %v429_v33 }
  0xc2   : > { %432 = vadd.xlane.f32.xlu0 %v431_v34 }
 0x109   : > { %v1469_v35 = vpop.xlane.xlu0 %323 }
 0x10a   : > { %v528_v38 = vmul.f32 3.0, %v1469_v35 }
 0x10c   : > { %v529_v39 = vmin.f32 %v528_v38, 256.0 }
 0x14b   : > { %v1472_v40 = vpop.xlane.xlu0 %432 }
 0x14c LB: >> { %v538_v44 = vsub.s32 %v1139_v42, %v1143_v43  ;;  %v1167_v47 = vmov 0.0   ;;  %s535_s5 = sadd.s32 1, %s1147_s5   ;;  %s1147_s5 = sphi %s1145_s5, %s535_s5   ;;  %v1143_v43 = vphi %v1141_v43, %v1142_v43   ;;  %v1139_v42 = vphi %v1137_v42, %v554_v42  }
 0x14d   : >> { %p532_p9 = scmp.ge.s32.totalorder %s535_s5, 32  }
 0x14e   : >> { %v539_v45 = vshra.s32 %v538_v44, 1  ;;  %v571_v60 = vand.u32 (%p532_p9), 127, %v309_v0  ;;  %v1149_v4 = vmov (%p532_p9), 256   ;;  %v1153_v6 = vmov (%p532_p9), 0   ;;  %s1491_s21 = smov (%p532_p9), 0  }
 0x150   : >> { %v540_v46 = vadd.s32 %v1143_v43, %v539_v45  ;;  %v572_v61 = vadd.s32 (%p532_p9), 128, %v571_v60 }
 0x152   : >> { %vm541_vm10 = vcmp.ge.s32.totalorder %v1453_v30, %v540_v46  ;;  %vm542_vm11 = vcmp.ge.s32.totalorder %v1455_v31, %v540_v46 }
 0x153   : >> { %v811_v48 = vsel %vm541_vm10, 1.0, %v1167_v47  ;;  %v812_v49 = vsel %vm542_vm11, 1.0, %v1167_v47 }
 0x154   : >> { %v547_v50 = vsel %vm319_vm1, %v811_v48, 0.0  ;;  %v548_v51 = vsel %vm319_vm1, %v812_v49, 0.0 }
 0x155   : >> { %v549_v52 = vadd.f32 %v548_v51, %v547_v50 }
 0x157   : >> { %550 = vadd.xlane.f32.xlu0 %v549_v52 }
 0x1df   : > { %534 = sbr.rel (!%p532_p9) target bundleno = 332 (0x14c), region = 118 }
 0x1e0   : >> { %v551_v53 = vpop.xlane.xlu0 %550 }
 0x1e1   : >> { %vm552_vm12 = vcmp.ge.f32.partialorder %v551_v53, %v529_v39 }
 0x1e2   : >> { %v553_v54 = vsel %vm552_vm12, %v540_v46, %v1143_v43   ;;  %v554_v42 = vsel %vm552_vm12, %v1139_v42, %v540_v46  }
 0x1e3   : >> { %v1142_v43 = vmov %v553_v54   ;;  %vm555_vm13 = vcmp.gt.s32.totalorder (%p532_p9), %v1453_v30, %v553_v54  ;;  %vm556_vm14 = vcmp.gt.s32.totalorder (%p532_p9), %v1455_v31, %v553_v54  ;;  %vm557_vm15 = vcmp.eq.s32.totalorder (%p532_p9), %v1453_v30, %v553_v54 }
 0x1e4   : > { %vm558_vm0 = vcmp.eq.s32.totalorder %v1455_v31, %v553_v54  ;;  %v813_v55 = vsel %vm555_vm13, 1.0, %v1165_v7  ;;  %v814_v56 = vsel %vm556_vm14, 1.0, %v1165_v7 }
 0x1e5   : > { %v563_v57 = vsel %vm319_vm1, %v813_v55, 0.0  ;;  %v564_v58 = vsel %vm319_vm1, %v814_v56, 0.0 }
 0x1e6   : > { %v565_v59 = vadd.f32 %v564_v58, %v563_v57 }
 0x1e8   : > { %566 = vadd.xlane.f32.xlu0 %v565_v59 }
 0x271   : > { %v567_v41 = vpop.xlane.xlu0 %566 }
 0x272   : > { %v568_v62 = vsub.f32 %v529_v39, %v567_v41 }
 0x274   : > { %v569_v63 = vmax.f32 %v568_v62, 0.0 }
 0x275 LB: >> { %v581_v9 = vsub.s32 %v1151_v4, %v1155_v6  ;;  %v1168_v0 = vmov 0.0   ;;  %s578_s21 = sadd.s32 1, %s1159_s21   ;;  %s1159_s21 = sphi %s1491_s21, %s578_s21   ;;  %v1155_v6 = vphi %v1153_v6, %v597_v6   ;;  %v1151_v4 = vphi %v1149_v4, %v1150_v4  }
 0x276   : >> { %p575_p11 = scmp.ge.s32.totalorder %s578_s21, 9  }
 0x277   : >> { %v582_v10 = vshra.s32 %v581_v9, 1  ;;  %v651_v33 = vmax.f32 (%p575_p11), %v1469_v35, 1e-06 }
 0x279   : >> { %v583_v12 = vadd.s32 %v1155_v6, %v582_v10  ;;  %957 = vrcp.f32 (%p575_p11), %v651_v33 }
 0x27b   : >> { %vm584_vm2 = vcmp.lt.s32.totalorder %v571_v60, %v583_v12  ;;  %vm585_vm3 = vcmp.lt.s32.totalorder %v572_v61, %v583_v12  ;;  %v596_v23 = vadd.s32 1, %v583_v12 }
 0x27c   : >> { %vm586_vm4 = vmand %vm557_vm15, %vm584_vm2 }
 0x27d   : >> { %vm587_vm5 = vmand %vm558_vm0, %vm585_vm3  ;;  %v588_v13 = vsel %vm586_vm4, 1.0, %v1168_v0 }
 0x27e   : >> { %v589_v17 = vsel %vm587_vm5, 1.0, %v1168_v0  ;;  %v590_v18 = vsel %vm319_vm1, %v588_v13, 0.0 }
 0x27f   : >> { %v591_v19 = vsel %vm319_vm1, %v589_v17, 0.0 }
 0x280   : >> { %v592_v22 = vadd.f32 %v591_v19, %v590_v18 }
 0x282   : >> { %593 = vadd.xlane.f32.xlu0 %v592_v22 }
 0x30a   : > { %577 = sbr.rel (!%p575_p11) target bundleno = 629 (0x275), region = 129 }
 0x30b   : >> { %v594_v26 = vpop.xlane.xlu0 %593 }
 0x30c   : >> { %vm595_vm6 = vcmp.ge.f32.partialorder %v594_v26, %v569_v63 }
 0x30d   : >> { %v597_v6 = vsel %vm595_vm6, %v1155_v6, %v596_v23   ;;  %v598_v15 = vsel %vm595_vm6, %v583_v12, %v1151_v4  }
 0x30e   : >> { %v1150_v4 = vmov %v598_v15   ;;  %vm599_vm7 = vcmp.lt.s32.totalorder (%p575_p11), %v571_v60, %v598_v15  ;;  %vm600_vm8 = vcmp.lt.s32.totalorder (%p575_p11), %v572_v61, %v598_v15 }
 0x30f   : > { %vm601_vm9 = vmand %vm557_vm15, %vm599_vm7 }
 0x310   : > { %vm602_vm10 = vmand %vm558_vm0, %vm600_vm8 }
 0x311   : > { %vm603_vm11 = vmor %vm555_vm13, %vm601_vm9  ;;  %vm647_vm13 = vcmp.gt.f32.partialorder %v1469_v35, 0.0 }
 0x312   : > { %vm604_vm12 = vmor %vm556_vm14, %vm602_vm10  ;;  %v815_v11 = vsel %vm603_vm11, 1.0, %v1165_v7  ;;  %vm654_vm14 = vcmask 0  }
 0x313   : > { %v816_v36 = vsel %vm604_vm12, 1.0, %v1165_v7 }
 0x314   : > { %v611_v37 = vcombine.low %v815_v11, %v816_v36 }
 0x316   : > { %v618_v27 = vrot.slane %v611_v37, %v1440_v24 }
 0x318   : > { %v625_v14 = vrot.slane %v618_v27, %v1440_v24 }
 0x31a   : > { %v627_v16 = vadd.f32 %v1383_v8, %v625_v14 }
 0x31c   : > { %v632_v1 = vrot.slane %v627_v16, %v1372_v2  ;;  %v636_v28 = vrot.slane %v627_v16, %v1375_v3  ;;  %v817_v2 = vsel %vm647_vm13, 1.0, %v1165_v7 }
 0x31e   : > { %v639_v29 = vmul.f32 %v632_v1, %v1435_v20  ;;  %v640_v30 = vmul.f32 %v636_v28, %v1437_v21  ;;  %v958_v20 = vpop.eup %957 }
 0x320   : > { %v641_v31 = vsel %vm319_vm1, %v639_v29, 0.0  ;;  %v642_v25 = vsel %vm319_vm1, %v640_v30, 0.0 }
 0x321   : > { %v643_v32 = vadd.f32 %v642_v25, %v641_v31 }
 0x323   : > { %644 = vadd.xlane.f32.xlu0 %v643_v32 }
 0x3ac   : > { %v645_v8 = vpop.xlane.xlu0 %644 }
 0x3ad   : > { %v646_v3 = vadd.f32 %v645_v8, %v1472_v40 }
 0x3af   : > { %v650_v24 = vmul.f32 %v817_v2, %v646_v3 }
 0x3b1   : > { %v653_v21 = vmul.f32 %v958_v20, %v650_v24 }
 0x3b3   : > { %655 = vst.msk [vmem:[%s297_s13] sm:$0x1] %vm654_vm14, %v653_v21 }
 0x3b4 PF: > { %p18_p12 = scmp.ge.s32.totalorder %s1215_s19, 4   ;;  %s1566_s15 = smov %s1127_s16 }
 0x3b5   : > { %s1567_s16 = smov %s1131_s17  ;;  %s1568_s17 = smov %s1225_s22 }
 0x3b6   : > { %s1569_s18 = smov %s1215_s19  ;;  %20 = sbr.rel (!%p18_p12) target bundleno = 8 (0x8), region = 140 }
 0x3bb   :  { %673 = vsyncpa [#allocation3], 1 }
 0x3bc   :  { %675 = vsyncpa [#allocation3 + $0x1], 1 }
 0x3bd   :  { %676 = vsyncpa [#allocation5], 1 }
 0x3be   :  { %678 = vsyncpa [#allocation5 + $0x1], 1 }
 0x3bf   :  { %679 = vsyncpa [#allocation8], 1 }

</bundles_post_ra>
